<compile_context>
chip_gen: v5e
topology: v5e:2x2
jax: 0.10.0
libtpu: 0.0.40
codegen_flags: <defaults>
</compile_context>

<pallas_src>
import functools

import jax
import jax.numpy as jnp
from jax.experimental import pallas as pl
from jax.experimental.pallas import tpu as pltpu

# Model hyper-parameters (small, consistent with the module's __init__).
D_MODEL = 32
D_HEAD = 8
N_HEAD = 4
HD = N_HEAD * D_HEAD
ATTEN_SCALE = 1.0 / (D_HEAD ** 0.5)
LN_EPS = 1e-5


def _make_mha_kernel(tb):
    """Kernel for one batch tile of `tb` elements; heads x batch fused into one einsum batch dim."""
    hb = N_HEAD * tb

    def mha_kernel(x_ref, ctx_ref, wq_ref, wkv_ref, wo_ref, bo_ref,
                   gamma_ref, beta_ref, o_ref):
        t1 = x_ref.shape[1]
        t2 = ctx_ref.shape[1]

        x = x_ref[...]          # (tb, t1, D)  f32 (kept in f32 for residual + LayerNorm)
        ctx = ctx_ref[...]      # (tb, t2, D)  f32

        # Head x batch-tile batched operands.  Only leading-dim broadcasts / reshapes
        # (no lane<->sublane relayout).  MXU operands are bf16.
        xb = jnp.broadcast_to(x.astype(jnp.bfloat16)[None],
                              (N_HEAD, tb, t1, D_MODEL)).reshape(hb, t1, D_MODEL)
        cb = jnp.broadcast_to(ctx.astype(jnp.bfloat16)[None],
                              (N_HEAD, tb, t2, D_MODEL)).reshape(hb, t2, D_MODEL)
        wq = jnp.broadcast_to(wq_ref[...][:, None],
                              (N_HEAD, tb, D_MODEL, D_HEAD)).reshape(hb, D_MODEL, D_HEAD)
        wkv = jnp.broadcast_to(wkv_ref[...][:, None],
                               (N_HEAD, tb, D_MODEL, 2 * D_HEAD)).reshape(hb, D_MODEL, 2 * D_HEAD)
        wo = jnp.broadcast_to(wo_ref[...][:, None],
                              (N_HEAD, tb, D_HEAD, D_MODEL)).reshape(hb, D_HEAD, D_MODEL)

        # Projections: one batched matmul for Q (attention scale pre-folded into W_q),
        # one for the fused K|V weights.
        q = jnp.einsum('bmd,bdk->bmk', xb, wq,
                       preferred_element_type=jnp.float32)              # (hb, t1, Dh)
        kv = jnp.einsum('bmd,bdk->bmk', cb, wkv,
                        preferred_element_type=jnp.float32)             # (hb, t2, 2*Dh)
        k = kv[..., :D_HEAD].astype(jnp.bfloat16)
        v = kv[..., D_HEAD:].astype(jnp.bfloat16)

        # One scores einsum + ONE softmax over the whole (hb, t1, t2) tensor.
        s = jnp.einsum('bqd,bkd->bqk', q.astype(jnp.bfloat16), k,
                       preferred_element_type=jnp.float32)              # (hb, t1, t2)
        s = s - jnp.max(s, axis=-1, keepdims=True)
        e = jnp.exp(s)
        p = e * pl.reciprocal(jnp.sum(e, axis=-1, keepdims=True), approx=True)

        # One PV einsum + one batched output-projection einsum.
        o_h = jnp.einsum('bqk,bkd->bqd', p.astype(jnp.bfloat16), v,
                         preferred_element_type=jnp.float32)            # (hb, t1, Dh)
        out_h = jnp.einsum('bqd,bdn->bqn', o_h.astype(jnp.bfloat16), wo,
                           preferred_element_type=jnp.float32)          # (hb, t1, D)

        # Head reduction: leading-dim split + (N_HEAD - 1) vector adds (VPU), i.e. a sum
        # over the head axis.  No matmuls / softmaxes inside this tiny unroll.
        out_heads = out_h.reshape(N_HEAD, tb, t1, D_MODEL)
        out = out_heads[0]
        for h in range(1, N_HEAD):
            out = out + out_heads[h]
        out = out + bo_ref[0]                                           # (tb, t1, D)

        # Residual + post-LayerNorm (default pre_layernorm=False); one-pass statistics, f32.
        y = x + out
        mu = jnp.mean(y, axis=-1, keepdims=True)
        var = jnp.mean(y * y, axis=-1, keepdims=True) - mu * mu
        o_ref[...] = (y - mu) * jax.lax.rsqrt(var + LN_EPS) * gamma_ref[0] + beta_ref[0]

    return mha_kernel


def prepare_params(wq, wk, wv, wo, dtype=jnp.bfloat16):
    """One-time (init-time) weight prep: PyTorch (out, in) Linear weights -> kernel operands.

    Hoisted out of the per-call jitted path: transpose to (in, out), split heads into a leading
    dim, fuse K|V into one operand, fold the attention scale into W_q, cast MXU operands to bf16.
    """
    wq_h = (wq.T * ATTEN_SCALE).reshape(D_MODEL, N_HEAD, D_HEAD).transpose(1, 0, 2)   # (H, D, Dh)
    wk_h = wk.T.reshape(D_MODEL, N_HEAD, D_HEAD).transpose(1, 0, 2)
    wv_h = wv.T.reshape(D_MODEL, N_HEAD, D_HEAD).transpose(1, 0, 2)
    wkv_h = jnp.concatenate([wk_h, wv_h], axis=-1)                                    # (H, D, 2*Dh)
    wo_h = wo.T.reshape(N_HEAD, D_HEAD, D_MODEL)                                      # (H, Dh, D)
    return wq_h.astype(dtype), wkv_h.astype(dtype), wo_h.astype(dtype)


def _default_batch_tile(B):
    """v7x has 2 TensorCores: split the ("parallel",) batch grid across them.
    Single-TC v5e/v6e keep a single grid step (no per-step overhead)."""
    try:
        kind = jax.devices()[0].device_kind.lower()
    except Exception:
        kind = ""
    if "v7" in kind and B >= 2 and B % 2 == 0:
        return B // 2
    return B


@functools.partial(jax.jit, static_argnames=("batch_tile",))
def mha_forward(x, ctx, wq_h, wkv_h, wo_h, bo, gamma, beta, *, batch_tile=None):
    B, T1, D = x.shape
    _, T2, _ = ctx.shape
    tb = B if batch_tile is None else batch_tile
    assert B % tb == 0, "batch_tile must divide batch size"

    kernel = _make_mha_kernel(tb)
    return pl.pallas_call(
        kernel,
        out_shape=jax.ShapeDtypeStruct((B, T1, D), jnp.float32),
        grid=(B // tb,),
        in_specs=[
            pl.BlockSpec((tb, T1, D), lambda i: (i, 0, 0)),              # x (this batch tile)
            pl.BlockSpec((tb, T2, D), lambda i: (i, 0, 0)),              # context
            pl.BlockSpec((N_HEAD, D, D_HEAD), lambda i: (0, 0, 0)),      # W_q (H, D, Dh), scale folded
            pl.BlockSpec((N_HEAD, D, 2 * D_HEAD), lambda i: (0, 0, 0)),  # [W_k | W_v] (H, D, 2*Dh)
            pl.BlockSpec((N_HEAD, D_HEAD, D), lambda i: (0, 0, 0)),      # W_out (H, Dh, D)
            pl.BlockSpec((1, D), lambda i: (0, 0)),                      # b_out
            pl.BlockSpec((1, D), lambda i: (0, 0)),                      # layer_norm gamma
            pl.BlockSpec((1, D), lambda i: (0, 0)),                      # layer_norm beta
        ],
        out_specs=pl.BlockSpec((tb, T1, D), lambda i: (i, 0, 0)),
        compiler_params=pltpu.CompilerParams(
            dimension_semantics=("parallel",)),
    )(x, ctx, wq_h, wkv_h, wo_h, bo, gamma, beta)


def mha_reference(x, ctx, wq, wk, wv, wo, bo, gamma, beta):
    """Pure-JAX f32 reference mirroring the PyTorch forward (mask=None, lookup_table=None, eval)."""
    B, T1, D = x.shape
    _, T2, _ = ctx.shape
    q = (x @ wq.T).reshape(B, T1, N_HEAD, D_HEAD).transpose(0, 2, 1, 3)
    k = (ctx @ wk.T).reshape(B, T2, N_HEAD, D_HEAD).transpose(0, 2, 1, 3)
    v = (ctx @ wv.T).reshape(B, T2, N_HEAD, D_HEAD).transpose(0, 2, 1, 3)
    scores = jnp.einsum("bhqd,bhkd->bhqk", q, k) * ATTEN_SCALE
    attn = jax.nn.softmax(scores, axis=-1)
    o = jnp.einsum("bhqk,bhkd->bhqd", attn, v).transpose(0, 2, 1, 3).reshape(B, T1, -1)
    out = o @ wo.T + bo[0]
    y = x + out
    mu = jnp.mean(y, axis=-1, keepdims=True)
    var = jnp.mean((y - mu) ** 2, axis=-1, keepdims=True)
    return (y - mu) * jax.lax.rsqrt(var + LN_EPS) * gamma[0] + beta[0]


if __name__ == "__main__":
    B, T1, T2 = 2, 8, 8

    key = jax.random.PRNGKey(0)
    keys = jax.random.split(key, 8)
    x = jax.random.normal(keys[0], (B, T1, D_MODEL), dtype=jnp.float32)
    ctx = jax.random.normal(keys[1], (B, T2, D_MODEL), dtype=jnp.float32)

    # Deterministic synthetic parameters (PyTorch Linear weight layout: (out, in)).
    wq = jax.random.normal(keys[2], (HD, D_MODEL), dtype=jnp.float32) * 0.1
    wk = jax.random.normal(keys[3], (HD, D_MODEL), dtype=jnp.float32) * 0.1
    wv = jax.random.normal(keys[4], (HD, D_MODEL), dtype=jnp.float32) * 0.1
    wo = jax.random.normal(keys[5], (D_MODEL, HD), dtype=jnp.float32) * 0.1
    bo = jax.random.normal(keys[6], (1, D_MODEL), dtype=jnp.float32) * 0.01
    gamma = jnp.ones((1, D_MODEL), dtype=jnp.float32)
    beta = jnp.zeros((1, D_MODEL), dtype=jnp.float32)

    # One-time, init-time weight preparation (hoisted out of the jitted per-call path).
    wq_h, wkv_h, wo_h = prepare_params(wq, wk, wv, wo)

    tb = _default_batch_tile(B)   # B//2 on v7x (two TensorCores), B on v5e/v6e
    out = mha_forward(x, ctx, wq_h, wkv_h, wo_h, bo, gamma, beta, batch_tile=tb)
    out = jax.block_until_ready(out)

    ref = mha_reference(x, ctx, wq, wk, wv, wo, bo, gamma, beta)
    assert out.shape == (B, T1, D_MODEL)
    # Tolerance accommodates bf16 MXU operands (f32 accumulation) and the EUP approximate
    # reciprocal in the softmax denominator; any real semantic/layout bug gives O(1) mismatches.
    assert jnp.allclose(out, ref, rtol=2e-2, atol=2e-2), "mismatch vs reference"

    print("KERNEL_OK")
</pallas_src>

<mosaic_0001>
module attributes {stable_mosaic.version = 11 : i64} {
  func.func @mha_kernel(%arg0: i32, %arg1: memref<2x8x32xf32, #tpu.memory_space<vmem>>, %arg2: memref<2x8x32xf32, #tpu.memory_space<vmem>>, %arg3: memref<4x32x8xbf16, #tpu.memory_space<vmem>>, %arg4: memref<4x32x16xbf16, #tpu.memory_space<vmem>>, %arg5: memref<4x8x32xbf16, #tpu.memory_space<vmem>>, %arg6: memref<1x32xf32, #tpu.memory_space<vmem>>, %arg7: memref<1x32xf32, #tpu.memory_space<vmem>>, %arg8: memref<1x32xf32, #tpu.memory_space<vmem>>, %arg9: memref<2x8x32xf32, #tpu.memory_space<vmem>>) attributes {dimension_semantics = [#tpu.dimension_semantics<parallel>], iteration_bounds = array<i64: 1>, scalar_prefetch = 0 : i64, scratch_operands = 0 : i64, tpu.core_type = #tpu.core_type<tc>, window_params = [{transform_indices = @transform_0, window_bounds = array<i64: 2, 8, 32>}, {transform_indices = @transform_1, window_bounds = array<i64: 2, 8, 32>}, {pipeline_mode = #tpu.pipeline_mode<synchronous>, transform_indices = @transform_2, window_bounds = array<i64: 4, 32, 8>}, {pipeline_mode = #tpu.pipeline_mode<synchronous>, transform_indices = @transform_3, window_bounds = array<i64: 4, 32, 16>}, {pipeline_mode = #tpu.pipeline_mode<synchronous>, transform_indices = @transform_4, window_bounds = array<i64: 4, 8, 32>}, {pipeline_mode = #tpu.pipeline_mode<synchronous>, transform_indices = @transform_5, window_bounds = array<i64: 1, 32>}, {pipeline_mode = #tpu.pipeline_mode<synchronous>, transform_indices = @transform_6, window_bounds = array<i64: 1, 32>}, {pipeline_mode = #tpu.pipeline_mode<synchronous>, transform_indices = @transform_7, window_bounds = array<i64: 1, 32>}, {transform_indices = @transform_8, window_bounds = array<i64: 2, 8, 32>}]} {
    %c0 = arith.constant 0 : index
    %c0_0 = arith.constant 0 : index
    %c0_1 = arith.constant 0 : index
    %0 = vector.load %arg1[%c0, %c0_0, %c0_1] : memref<2x8x32xf32, #tpu.memory_space<vmem>>, vector<2x8x32xf32>
    %c0_2 = arith.constant 0 : index
    %c0_3 = arith.constant 0 : index
    %c0_4 = arith.constant 0 : index
    %1 = vector.load %arg2[%c0_2, %c0_3, %c0_4] : memref<2x8x32xf32, #tpu.memory_space<vmem>>, vector<2x8x32xf32>
    %2 = arith.truncf %0 : vector<2x8x32xf32> to vector<2x8x32xbf16>
    %3 = vector.shape_cast %2 : vector<2x8x32xbf16> to vector<1x2x8x32xbf16>
    %4 = vector.shape_cast %3 : vector<1x2x8x32xbf16> to vector<1x2x8x32xbf16>
    %5 = vector.broadcast %4 : vector<1x2x8x32xbf16> to vector<4x2x8x32xbf16>
    %6 = vector.shape_cast %5 : vector<4x2x8x32xbf16> to vector<8x8x32xbf16>
    %7 = arith.truncf %1 : vector<2x8x32xf32> to vector<2x8x32xbf16>
    %8 = vector.shape_cast %7 : vector<2x8x32xbf16> to vector<1x2x8x32xbf16>
    %9 = vector.shape_cast %8 : vector<1x2x8x32xbf16> to vector<1x2x8x32xbf16>
    %10 = vector.broadcast %9 : vector<1x2x8x32xbf16> to vector<4x2x8x32xbf16>
    %11 = vector.shape_cast %10 : vector<4x2x8x32xbf16> to vector<8x8x32xbf16>
    %c0_5 = arith.constant 0 : index
    %c0_6 = arith.constant 0 : index
    %c0_7 = arith.constant 0 : index
    %12 = vector.load %arg3[%c0_5, %c0_6, %c0_7] : memref<4x32x8xbf16, #tpu.memory_space<vmem>>, vector<4x32x8xbf16>
    %13 = vector.shape_cast %12 : vector<4x32x8xbf16> to vector<4x1x32x8xbf16>
    %14 = vector.shape_cast %13 : vector<4x1x32x8xbf16> to vector<4x1x32x8xbf16>
    %15 = vector.broadcast %14 : vector<4x1x32x8xbf16> to vector<4x2x32x8xbf16>
    %16 = vector.shape_cast %15 : vector<4x2x32x8xbf16> to vector<8x32x8xbf16>
    %c0_8 = arith.constant 0 : index
    %c0_9 = arith.constant 0 : index
    %c0_10 = arith.constant 0 : index
    %17 = vector.load %arg4[%c0_8, %c0_9, %c0_10] : memref<4x32x16xbf16, #tpu.memory_space<vmem>>, vector<4x32x16xbf16>
    %18 = vector.shape_cast %17 : vector<4x32x16xbf16> to vector<4x1x32x16xbf16>
    %19 = vector.shape_cast %18 : vector<4x1x32x16xbf16> to vector<4x1x32x16xbf16>
    %20 = vector.broadcast %19 : vector<4x1x32x16xbf16> to vector<4x2x32x16xbf16>
    %21 = vector.shape_cast %20 : vector<4x2x32x16xbf16> to vector<8x32x16xbf16>
    %c0_11 = arith.constant 0 : index
    %c0_12 = arith.constant 0 : index
    %c0_13 = arith.constant 0 : index
    %22 = vector.load %arg5[%c0_11, %c0_12, %c0_13] : memref<4x8x32xbf16, #tpu.memory_space<vmem>>, vector<4x8x32xbf16>
    %23 = vector.shape_cast %22 : vector<4x8x32xbf16> to vector<4x1x8x32xbf16>
    %24 = vector.shape_cast %23 : vector<4x1x8x32xbf16> to vector<4x1x8x32xbf16>
    %25 = vector.broadcast %24 : vector<4x1x8x32xbf16> to vector<4x2x8x32xbf16>
    %26 = vector.shape_cast %25 : vector<4x2x8x32xbf16> to vector<8x8x32xbf16>
    "tpu.trace_start"() <{level = 10 : i32, message = "bmd,bdk->bmk"}> : () -> ()
    %cst = arith.constant dense<0.000000e+00> : vector<8x8x8xf32>
    %27 = tpu.matmul %6, %16, %cst {dimension_numbers = #tpu.dot_dimension_numbers<[2], [1], [1], [2], [0, 0, 0, 1, 1, 2], [0], [0]>} : vector<8x8x32xbf16>, vector<8x32x8xbf16>, vector<8x8x8xf32> -> vector<8x8x8xf32>
    %cst_14 = arith.constant dense<0.000000e+00> : vector<8x8x16xf32>
    %28 = tpu.matmul %11, %21, %cst_14 {dimension_numbers = #tpu.dot_dimension_numbers<[2], [1], [1], [2], [0, 0, 0, 1, 1, 2], [0], [0]>} : vector<8x8x32xbf16>, vector<8x32x16xbf16>, vector<8x8x16xf32> -> vector<8x8x16xf32>
    "tpu.trace_stop"() : () -> ()
    %29 = vector.extract_strided_slice %28 {offsets = [0, 0, 0], sizes = [8, 8, 8], strides = [1, 1, 1]} : vector<8x8x16xf32> to vector<8x8x8xf32>
    %30 = arith.truncf %29 : vector<8x8x8xf32> to vector<8x8x8xbf16>
    %31 = vector.extract_strided_slice %28 {offsets = [0, 0, 8], sizes = [8, 8, 8], strides = [1, 1, 1]} : vector<8x8x16xf32> to vector<8x8x8xf32>
    %32 = arith.truncf %31 : vector<8x8x8xf32> to vector<8x8x8xbf16>
    %33 = arith.truncf %27 : vector<8x8x8xf32> to vector<8x8x8xbf16>
    "tpu.trace_start"() <{level = 10 : i32, message = "bqd,bkd->bqk"}> : () -> ()
    %cst_15 = arith.constant dense<0.000000e+00> : vector<8x8x8xf32>
    %34 = tpu.matmul %33, %30, %cst_15 {dimension_numbers = #tpu.dot_dimension_numbers<[2], [2], [1], [1], [0, 0, 0, 1, 1, 1], [0], [0]>} : vector<8x8x8xbf16>, vector<8x8x8xbf16>, vector<8x8x8xf32> -> vector<8x8x8xf32>
    "tpu.trace_stop"() : () -> ()
    %cst_16 = arith.constant dense<0xFF800000> : vector<8x8xf32>
    %35 = vector.multi_reduction <maximumf>, %34, %cst_16 [2] : vector<8x8x8xf32> to vector<8x8xf32>
    %36 = vector.shape_cast %35 : vector<8x8xf32> to vector<8x8x1xf32>
    %37 = vector.broadcast %36 : vector<8x8x1xf32> to vector<8x8x8xf32>
    %38 = arith.subf %34, %37 : vector<8x8x8xf32>
    %39 = math.exp %38 : vector<8x8x8xf32>
    %cst_17 = arith.constant dense<0.000000e+00> : vector<8x8xf32>
    %40 = vector.multi_reduction <add>, %39, %cst_17 [2] : vector<8x8x8xf32> to vector<8x8xf32>
    %41 = vector.shape_cast %40 : vector<8x8xf32> to vector<8x8x1xf32>
    %42 = tpu.reciprocal %41 {approx = true} : vector<8x8x1xf32> -> vector<8x8x1xf32>
    %43 = vector.broadcast %42 : vector<8x8x1xf32> to vector<8x8x8xf32>
    %44 = arith.mulf %39, %43 : vector<8x8x8xf32>
    %45 = arith.truncf %44 : vector<8x8x8xf32> to vector<8x8x8xbf16>
    "tpu.trace_start"() <{level = 10 : i32, message = "bqk,bkd->bqd"}> : () -> ()
    %cst_18 = arith.constant dense<0.000000e+00> : vector<8x8x8xf32>
    %46 = tpu.matmul %45, %32, %cst_18 {dimension_numbers = #tpu.dot_dimension_numbers<[2], [1], [1], [2], [0, 0, 0, 1, 1, 2], [0], [0]>} : vector<8x8x8xbf16>, vector<8x8x8xbf16>, vector<8x8x8xf32> -> vector<8x8x8xf32>
    "tpu.trace_stop"() : () -> ()
    %47 = arith.truncf %46 : vector<8x8x8xf32> to vector<8x8x8xbf16>
    "tpu.trace_start"() <{level = 10 : i32, message = "bqd,bdn->bqn"}> : () -> ()
    %cst_19 = arith.constant dense<0.000000e+00> : vector<8x8x32xf32>
    %48 = tpu.matmul %47, %26, %cst_19 {dimension_numbers = #tpu.dot_dimension_numbers<[2], [1], [1], [2], [0, 0, 0, 1, 1, 2], [0], [0]>} : vector<8x8x8xbf16>, vector<8x8x32xbf16>, vector<8x8x32xf32> -> vector<8x8x32xf32>
    "tpu.trace_stop"() : () -> ()
    %49 = vector.shape_cast %48 : vector<8x8x32xf32> to vector<4x2x8x32xf32>
    %50 = vector.extract_strided_slice %49 {offsets = [0, 0, 0, 0], sizes = [1, 2, 8, 32], strides = [1, 1, 1, 1]} : vector<4x2x8x32xf32> to vector<1x2x8x32xf32>
    %51 = vector.shape_cast %50 : vector<1x2x8x32xf32> to vector<2x8x32xf32>
    %52 = vector.extract_strided_slice %49 {offsets = [1, 0, 0, 0], sizes = [1, 2, 8, 32], strides = [1, 1, 1, 1]} : vector<4x2x8x32xf32> to vector<1x2x8x32xf32>
    %53 = vector.shape_cast %52 : vector<1x2x8x32xf32> to vector<2x8x32xf32>
    %54 = arith.addf %51, %53 : vector<2x8x32xf32>
    %55 = vector.extract_strided_slice %49 {offsets = [2, 0, 0, 0], sizes = [1, 2, 8, 32], strides = [1, 1, 1, 1]} : vector<4x2x8x32xf32> to vector<1x2x8x32xf32>
    %56 = vector.shape_cast %55 : vector<1x2x8x32xf32> to vector<2x8x32xf32>
    %57 = arith.addf %54, %56 : vector<2x8x32xf32>
    %58 = vector.extract_strided_slice %49 {offsets = [3, 0, 0, 0], sizes = [1, 2, 8, 32], strides = [1, 1, 1, 1]} : vector<4x2x8x32xf32> to vector<1x2x8x32xf32>
    %59 = vector.shape_cast %58 : vector<1x2x8x32xf32> to vector<2x8x32xf32>
    %60 = arith.addf %57, %59 : vector<2x8x32xf32>
    %c0_20 = arith.constant 0 : index
    %c0_21 = arith.constant 0 : index
    %61 = vector.load %arg6[%c0_20, %c0_21] : memref<1x32xf32, #tpu.memory_space<vmem>>, vector<1x32xf32>
    %62 = vector.shape_cast %61 : vector<1x32xf32> to vector<32xf32>
    %63 = vector.shape_cast %62 : vector<32xf32> to vector<1x1x32xf32>
    %64 = vector.broadcast %63 : vector<1x1x32xf32> to vector<2x8x32xf32>
    %65 = arith.addf %60, %64 : vector<2x8x32xf32>
    %66 = arith.addf %0, %65 : vector<2x8x32xf32>
    %cst_22 = arith.constant dense<0.000000e+00> : vector<2x8xf32>
    %67 = vector.multi_reduction <add>, %66, %cst_22 [2] : vector<2x8x32xf32> to vector<2x8xf32>
    %68 = vector.shape_cast %67 : vector<2x8xf32> to vector<2x8x1xf32>
    %cst_23 = arith.constant 3.200000e+01 : f32
    %69 = vector.broadcast %cst_23 : f32 to vector<2x8x1xf32>
    %70 = arith.divf %68, %69 : vector<2x8x1xf32>
    %71 = arith.mulf %66, %66 : vector<2x8x32xf32>
    %cst_24 = arith.constant dense<0.000000e+00> : vector<2x8xf32>
    %72 = vector.multi_reduction <add>, %71, %cst_24 [2] : vector<2x8x32xf32> to vector<2x8xf32>
    %73 = vector.shape_cast %72 : vector<2x8xf32> to vector<2x8x1xf32>
    %cst_25 = arith.constant 3.200000e+01 : f32
    %74 = vector.broadcast %cst_25 : f32 to vector<2x8x1xf32>
    %75 = arith.divf %73, %74 : vector<2x8x1xf32>
    %76 = arith.mulf %70, %70 : vector<2x8x1xf32>
    %77 = arith.subf %75, %76 : vector<2x8x1xf32>
    %78 = vector.broadcast %70 : vector<2x8x1xf32> to vector<2x8x32xf32>
    %79 = arith.subf %66, %78 : vector<2x8x32xf32>
    %cst_26 = arith.constant 9.99999974E-6 : f32
    %80 = vector.broadcast %cst_26 : f32 to vector<2x8x1xf32>
    %81 = arith.addf %77, %80 : vector<2x8x1xf32>
    %82 = math.rsqrt %81 : vector<2x8x1xf32>
    %83 = vector.broadcast %82 : vector<2x8x1xf32> to vector<2x8x32xf32>
    %84 = arith.mulf %79, %83 : vector<2x8x32xf32>
    %c0_27 = arith.constant 0 : index
    %c0_28 = arith.constant 0 : index
    %85 = vector.load %arg7[%c0_27, %c0_28] : memref<1x32xf32, #tpu.memory_space<vmem>>, vector<1x32xf32>
    %86 = vector.shape_cast %85 : vector<1x32xf32> to vector<32xf32>
    %87 = vector.shape_cast %86 : vector<32xf32> to vector<1x1x32xf32>
    %88 = vector.broadcast %87 : vector<1x1x32xf32> to vector<2x8x32xf32>
    %89 = arith.mulf %84, %88 : vector<2x8x32xf32>
    %c0_29 = arith.constant 0 : index
    %c0_30 = arith.constant 0 : index
    %90 = vector.load %arg8[%c0_29, %c0_30] : memref<1x32xf32, #tpu.memory_space<vmem>>, vector<1x32xf32>
    %91 = vector.shape_cast %90 : vector<1x32xf32> to vector<32xf32>
    %92 = vector.shape_cast %91 : vector<32xf32> to vector<1x1x32xf32>
    %93 = vector.broadcast %92 : vector<1x1x32xf32> to vector<2x8x32xf32>
    %94 = arith.addf %89, %93 : vector<2x8x32xf32>
    %c0_31 = arith.constant 0 : index
    %c0_32 = arith.constant 0 : index
    %c0_33 = arith.constant 0 : index
    %95 = vector.load %arg9[%c0_31, %c0_32, %c0_33] : memref<2x8x32xf32, #tpu.memory_space<vmem>>, vector<2x8x32xf32>
    tpu.vector_store %arg9[%c0_31, %c0_32, %c0_33], %94 {strides = array<i32>} : memref<2x8x32xf32, #tpu.memory_space<vmem>>, vector<2x8x32xf32>,
    return
  }
  func.func @transform_0(%arg0: i32) -> (i32, i32, i32) {
    %c0_i32 = arith.constant 0 : i32
    %c0_i32_0 = arith.constant 0 : i32
    %c0_i32_1 = arith.constant 0 : i32
    return %arg0, %c0_i32, %c0_i32_0 : i32, i32, i32
  }
  func.func @transform_1(%arg0: i32) -> (i32, i32, i32) {
    %c0_i32 = arith.constant 0 : i32
    %c0_i32_0 = arith.constant 0 : i32
    %c0_i32_1 = arith.constant 0 : i32
    return %arg0, %c0_i32, %c0_i32_0 : i32, i32, i32
  }
  func.func @transform_2(%arg0: i32) -> (i32, i32, i32) {
    %c0_i32 = arith.constant 0 : i32
    %c0_i32_0 = arith.constant 0 : i32
    %c0_i32_1 = arith.constant 0 : i32
    %c0_i32_2 = arith.constant 0 : i32
    return %c0_i32, %c0_i32_0, %c0_i32_1 : i32, i32, i32
  }
  func.func @transform_3(%arg0: i32) -> (i32, i32, i32) {
    %c0_i32 = arith.constant 0 : i32
    %c0_i32_0 = arith.constant 0 : i32
    %c0_i32_1 = arith.constant 0 : i32
    %c0_i32_2 = arith.constant 0 : i32
    return %c0_i32, %c0_i32_0, %c0_i32_1 : i32, i32, i32
  }
  func.func @transform_4(%arg0: i32) -> (i32, i32, i32) {
    %c0_i32 = arith.constant 0 : i32
    %c0_i32_0 = arith.constant 0 : i32
    %c0_i32_1 = arith.constant 0 : i32
    %c0_i32_2 = arith.constant 0 : i32
    return %c0_i32, %c0_i32_0, %c0_i32_1 : i32, i32, i32
  }
  func.func @transform_5(%arg0: i32) -> (i32, i32) {
    %c0_i32 = arith.constant 0 : i32
    %c0_i32_0 = arith.constant 0 : i32
    %c0_i32_1 = arith.constant 0 : i32
    return %c0_i32, %c0_i32_0 : i32, i32
  }
  func.func @transform_6(%arg0: i32) -> (i32, i32) {
    %c0_i32 = arith.constant 0 : i32
    %c0_i32_0 = arith.constant 0 : i32
    %c0_i32_1 = arith.constant 0 : i32
    return %c0_i32, %c0_i32_0 : i32, i32
  }
  func.func @transform_7(%arg0: i32) -> (i32, i32) {
    %c0_i32 = arith.constant 0 : i32
    %c0_i32_0 = arith.constant 0 : i32
    %c0_i32_1 = arith.constant 0 : i32
    return %c0_i32, %c0_i32_0 : i32, i32
  }
  func.func @transform_8(%arg0: i32) -> (i32, i32, i32) {
    %c0_i32 = arith.constant 0 : i32
    %c0_i32_0 = arith.constant 0 : i32
    %c0_i32_1 = arith.constant 0 : i32
    return %arg0, %c0_i32, %c0_i32_0 : i32, i32, i32
  }
}

</mosaic_0001>

<bundles_post_ra>
// kernel: mha_forward.1
= control target key start
LH: loop header
LB: loop body
LE: loop exit
PB: predicated region body
PF: predicated region fallthrough
CT: control target
= control target key end

     0   :  { %s1577_s0 = inlined_call_operand.vmem [shape: f32[2,8,32], index: 0, kind: input, shape index: {}]   ;;  %s1578_s1 = inlined_call_operand.vmem [shape: f32[2,8,32], index: 1, kind: input, shape index: {}]   ;;  %s1579_s2 = inlined_call_operand.vmem [shape: bf16[4,32,8], index: 2, kind: input, shape index: {}]   ;;  %s1580_s3 = inlined_call_operand.vmem [shape: bf16[4,32,16], index: 3, kind: input, shape index: {}]   ;;  %s1581_s4 = inlined_call_operand.vmem [shape: bf16[4,8,32], index: 4, kind: input, shape index: {}]   ;;  %s1582_s5 = inlined_call_operand.vmem [shape: f32[1,32], index: 5, kind: input, shape index: {}]   ;;  %s1583_s6 = inlined_call_operand.vmem [shape: f32[1,32], index: 6, kind: input, shape index: {}]   ;;  %s1584_s7 = inlined_call_operand.vmem [shape: f32[1,32], index: 7, kind: input, shape index: {}]   ;;  %s1585_s8 = inlined_call_operand.hbm [shape: f32[2,8,32], index: 8, kind: output, shape index: {}]  }
   0x1   :  { %v1204_v0 = vld [vmem:[%s1579_s2 + $0x8] sm:$0xff]  ;;  %v1206_v1 = vld [vmem:[%s1579_s2 + $0x18] sm:$0xff]  ;;  %v1203_v2 = vld [vmem:[%s1579_s2] sm:$0xff] }
   0x2   :  { %97 = vmatpush.bf16.msra.mxu0 %v1204_v0  ;;  %113 = vmatpush.bf16.msra.mxu1 %v1204_v0  ;;  %v1353_v3 = vld [vmem:[%s1577_s0] sm:$0xff]  ;;  %v1358_v4 = vld [vmem:[%s1577_s0 + $0x8] sm:$0xff]  ;;  %v1205_v5 = vld [vmem:[%s1579_s2 + $0x10] sm:$0xff] }
   0x3   :  { %138 = vmatpush.bf16.msra.mxu2 %v1206_v1  ;;  %151 = vmatpush.bf16.msra.mxu3 %v1206_v1  ;;  %v1208_v6 = vld [vmem:[%s1579_s2 + $0x28] sm:$0xff]  ;;  %v35_v7 = vpack.c.bf16 %v1353_v3, %v1353_v3  ;;  %v36_v8 = vpack.c.bf16 %v1358_v4, %v1358_v4 }
   0x4   :  { %13 = vsyncpa [#allocation3], 0  ;;  %vm87_vm0 = vcmask 261120   ;;  %v1210_v9 = vld [vmem:[%s1579_s2 + $0x38] sm:$0xff]  ;;  %v1207_v10 = vld [vmem:[%s1579_s2 + $0x20] sm:$0xff]  ;;  %vm408_vm1 = vcmask 64512  }
   0x5   :  { %v1212_v11 = vld [vmem:[%s1580_s3 + $0x8] sm:$0xff]  ;;  %v1209_v12 = vld [vmem:[%s1579_s2 + $0x30] sm:$0xff]  ;;  %v1214_v13 = vld [vmem:[%s1580_s3 + $0x18] sm:$0xff]  ;;  %vm665_vm2 = vcmask 1043456   ;;  %s1087_s10 = sshll.u32 %s1585_s8, 4  ;;  %s1294_s11 = smov 128   ;;  %s1088_s10 = int_to_ptr.hbm [resolvable:$true] %s1087_s10 }
   0x6   :  { %98 = vmatpush.bf16.msra.mxu0 %v1203_v2  ;;  %114 = vmatpush.bf16.msra.mxu1 %v1203_v2  ;;  %v1211_v14 = vld [vmem:[%s1580_s3] sm:$0xff]  ;;  %v1213_v15 = vld [vmem:[%s1580_s3 + $0x10] sm:$0xff]  ;;  %v1216_v16 = vld [vmem:[%s1580_s3 + $0x28] sm:$0xff]  ;;  %s1295_s12 = smov 8  }
   0x7   :  { %139 = vmatpush.bf16.msra.mxu2 %v1205_v5  ;;  %152 = vmatpush.bf16.msra.mxu3 %v1205_v5  ;;  %v1218_v17 = vld [vmem:[%s1580_s3 + $0x38] sm:$0xff]  ;;  %v1215_v18 = vld [vmem:[%s1580_s3 + $0x20] sm:$0xff]  ;;  %v1217_v19 = vld [vmem:[%s1580_s3 + $0x30] sm:$0xff] }
   0x8   :  { %v33_v20 = vld [vmem:[%s1578_s1] sm:$0xff]  ;;  %v34_v21 = vld [vmem:[%s1578_s1 + $0x8] sm:$0xff]  ;;  %s1291_s1 = smov 120  }
   0x9   :  { %1107 = vmatmul.msk.bf16.vlgmr.msra.gmra.mxu0 %vm87_vm0, %v35_v7  ;;  %1108 = vmatmul.msk.bf16.vlgmr.msra.gmra.mxu1 %vm87_vm0, %v36_v8  ;;  %v37_v22 = vpack.c.bf16 %v33_v20, %v33_v20  ;;  %v38_v23 = vpack.c.bf16 %v34_v21, %v34_v21 }
   0xa   :  { %176 = vmatpush.bf16.msrb.mxu0 %v1208_v6  ;;  %189 = vmatpush.bf16.msrb.mxu1 %v1208_v6 }
   0xb   :  { %1117 = vmatmul.msk.bf16.vlgmr.msra.gmra.mxu2 %vm87_vm0, %v35_v7  ;;  %1118 = vmatmul.msk.bf16.vlgmr.msra.gmra.mxu3 %vm87_vm0, %v36_v8 }
   0xc   :  { %214 = vmatpush.bf16.msrb.mxu2 %v1210_v9  ;;  %227 = vmatpush.bf16.msrb.mxu3 %v1210_v9 }
   0xe   :  { %177 = vmatpush.bf16.msrb.mxu0 %v1207_v10  ;;  %190 = vmatpush.bf16.msrb.mxu1 %v1207_v10 }
  0x10   :  { %215 = vmatpush.bf16.msrb.mxu2 %v1209_v12  ;;  %228 = vmatpush.bf16.msrb.mxu3 %v1209_v12 }
  0x12   :  { %255 = vmatpush.bf16.msra.mxu0 %v1212_v11  ;;  %271 = vmatpush.bf16.msra.mxu1 %v1212_v11 }
  0x14   :  { %296 = vmatpush.bf16.msra.mxu2 %v1214_v13  ;;  %309 = vmatpush.bf16.msra.mxu3 %v1214_v13 }
  0x16   :  { %256 = vmatpush.bf16.msra.mxu0 %v1211_v14  ;;  %272 = vmatpush.bf16.msra.mxu1 %v1211_v14 }
  0x18   :  { %297 = vmatpush.bf16.msra.mxu2 %v1213_v15  ;;  %310 = vmatpush.bf16.msra.mxu3 %v1213_v15 }
  0x19   :  { %1127 = vmatmul.msk.bf16.vlgmr.msrb.gmra.mxu0 %vm87_vm0, %v35_v7  ;;  %1128 = vmatmul.msk.bf16.vlgmr.msrb.gmra.mxu1 %vm87_vm0, %v36_v8 }
  0x1a   :  { %334 = vmatpush.bf16.msrb.mxu0 %v1216_v16  ;;  %347 = vmatpush.bf16.msrb.mxu1 %v1216_v16 }
  0x1b   :  { %1137 = vmatmul.msk.bf16.vlgmr.msrb.gmra.mxu2 %vm87_vm0, %v35_v7  ;;  %1138 = vmatmul.msk.bf16.vlgmr.msrb.gmra.mxu3 %vm87_vm0, %v36_v8 }
  0x1c   :  { %372 = vmatpush.bf16.msrb.mxu2 %v1218_v17  ;;  %385 = vmatpush.bf16.msrb.mxu3 %v1218_v17 }
  0x1e   :  { %335 = vmatpush.bf16.msrb.mxu0 %v1215_v18  ;;  %348 = vmatpush.bf16.msrb.mxu1 %v1215_v18 }
  0x20   :  { %373 = vmatpush.bf16.msrb.mxu2 %v1217_v19  ;;  %386 = vmatpush.bf16.msrb.mxu3 %v1217_v19 }
  0x29   :  { %1147 = vmatmul.msk.bf16.vlgmr.msra.gmra.mxu0 %vm87_vm0, %v37_v22  ;;  %1148 = vmatmul.msk.bf16.vlgmr.msra.gmra.mxu1 %vm87_vm0, %v38_v23 }
  0x2b   :  { %1157 = vmatmul.msk.bf16.vlgmr.msra.gmra.mxu2 %vm87_vm0, %v37_v22  ;;  %1158 = vmatmul.msk.bf16.vlgmr.msra.gmra.mxu3 %vm87_vm0, %v38_v23 }
  0x39   :  { %1167 = vmatmul.msk.bf16.vlgmr.msrb.gmra.mxu0 %vm87_vm0, %v37_v22  ;;  %1168 = vmatmul.msk.bf16.vlgmr.msrb.gmra.mxu1 %vm87_vm0, %v38_v23 }
  0x3b   :  { %1177 = vmatmul.msk.bf16.vlgmr.msrb.gmra.mxu2 %vm87_vm0, %v37_v22  ;;  %1178 = vmatmul.msk.bf16.vlgmr.msrb.gmra.mxu3 %vm87_vm0, %v38_v23 }
  0x86   :  { %v100_v24 = vpop.f32.mrf.mxu0  ;;  %v116_v25 = vpop.f32.mrf.mxu1 }
  0x87   :  { %v400_v54 = vpack.c.bf16 %v100_v24, %v100_v24  ;;  %v401_v55 = vpack.c.bf16 %v116_v25, %v116_v25 }
  0x8e   :  { %v141_v26 = vpop.f32.mrf.mxu2  ;;  %v154_v27 = vpop.f32.mrf.mxu3 }
  0x8f   :  { %v102_v28 = vpop.f32.mrf.mxu0  ;;  %v118_v29 = vpop.f32.mrf.mxu1  ;;  %v402_v0 = vpack.c.bf16 %v141_v26, %v141_v26  ;;  %v403_v1 = vpack.c.bf16 %v154_v27, %v154_v27 }
  0x96   :  { %v143_v30 = vpop.f32.mrf.mxu2  ;;  %v156_v31 = vpop.f32.mrf.mxu3 }
  0x97   :  { %v1425_v32 = vpop.f32.mrf.mxu0  ;;  %v1427_v33 = vpop.f32.mrf.mxu1 }
  0x98   :  { %v404_v16 = vpack.c.bf16 %v1425_v32, %v1425_v32  ;;  %v405_v17 = vpack.c.bf16 %v1427_v33, %v1427_v33 }
  0x9e   :  { %v1429_v34 = vpop.f32.mrf.mxu2  ;;  %v1431_v35 = vpop.f32.mrf.mxu3 }
  0x9f   :  { %v181_v36 = vpop.f32.mrf.mxu0  ;;  %v194_v37 = vpop.f32.mrf.mxu1  ;;  %v406_v22 = vpack.c.bf16 %v1429_v34, %v1429_v34  ;;  %v407_v23 = vpack.c.bf16 %v1431_v35, %v1431_v35 }
  0xa6   :  { %v219_v38 = vpop.f32.mrf.mxu2  ;;  %v232_v39 = vpop.f32.mrf.mxu3 }
  0xa7   :  { %v258_v40 = vpop.f32.mrf.mxu0  ;;  %v274_v41 = vpop.f32.mrf.mxu1 }
  0xa8   :  { %v392_v42 = vpack.c.bf16 %v258_v40, %v258_v40  ;;  %v1433_v43 = vpack.c.bf16 %v274_v41, %v274_v41 }
  0xaa   :  { %v413_v44 = vsel %vm408_vm1, %v392_v42, 0  ;;  %v432_v45 = vsel %vm408_vm1, %v1433_v43, 0  ;;  %v658_v46 = vunpack.c.l.b16 %v392_v42 }
  0xab   :  { %422 = vmatpush.bf16.xpose.msra.mxu0 %v413_v44  ;;  %441 = vmatpush.bf16.xpose.msra.mxu1 %v432_v45 }
  0xac   :  { %v659_v47 = vpack.c.b16 %v658_v46, %v658_v46 }
  0xae   :  { %v299_v48 = vpop.f32.mrf.mxu2  ;;  %v312_v49 = vpop.f32.mrf.mxu3  ;;  %660 = vrot.lane.b32.xlu1 %v659_v47, %s1291_s1 }
  0xaf   :  { %v394_v50 = vpack.c.bf16 %v299_v48, %v299_v48  ;;  %v395_v51 = vpack.c.bf16 %v312_v49, %v312_v49  ;;  %v260_v52 = vpop.f32.mrf.mxu0  ;;  %v276_v53 = vpop.f32.mrf.mxu1 }
  0xb1   :  { %v451_v56 = vsel %vm408_vm1, %v394_v50, 0  ;;  %v707_v57 = vunpack.c.l.b16 %v394_v50  ;;  %v470_v58 = vsel %vm408_vm1, %v395_v51, 0  ;;  %v731_v59 = vunpack.c.l.b16 %v395_v51 }
  0xb2   :  { %460 = vmatpush.bf16.xpose.msra.mxu2 %v451_v56  ;;  %479 = vmatpush.bf16.xpose.msra.mxu3 %v470_v58 }
  0xb3   :  { %1179 = vmatmul.msk.bf16.vlgmr.msra.gmra.mxu0 %vm408_vm1, %v400_v54  ;;  %1180 = vmatmul.msk.bf16.vlgmr.msra.gmra.mxu1 %vm408_vm1, %v401_v55  ;;  %v732_v60 = vpack.c.b16 %v731_v59, %v731_v59  ;;  %v708_v61 = vpack.c.b16 %v707_v57, %v707_v57 }
  0xb5   :  { %733 = vrot.lane.b32.xlu2 %v732_v60, %s1291_s1 }
  0xb6   :  { %v301_v62 = vpop.f32.mrf.mxu2  ;;  %v314_v63 = vpop.f32.mrf.mxu3  ;;  %709 = vrot.lane.b32.xlu1 %v708_v61, %s1291_s1 }
  0xb7   :  { %v337_v2 = vpop.f32.mrf.mxu0  ;;  %v350_v5 = vpop.f32.mrf.mxu1 }
  0xb8   :  { %v1445_v6 = vpack.c.bf16 %v337_v2, %v337_v2  ;;  %v1447_v7 = vpack.c.bf16 %v350_v5, %v350_v5 }
  0xb9   :  { %1181 = vmatmul.msk.bf16.vlgmr.msra.gmra.mxu2 %vm408_vm1, %v402_v0  ;;  %1182 = vmatmul.msk.bf16.vlgmr.msra.gmra.mxu3 %vm408_vm1, %v403_v1 }
  0xba   :  { %v489_v8 = vsel %vm408_vm1, %v1445_v6, 0  ;;  %v508_v9 = vsel %vm408_vm1, %v1447_v7, 0 }
  0xbb   :  { %498 = vmatpush.bf16.xpose.msrb.mxu0 %v489_v8  ;;  %517 = vmatpush.bf16.xpose.msrb.mxu1 %v508_v9 }
  0xbe   :  { %v375_v10 = vpop.f32.mrf.mxu2  ;;  %v388_v11 = vpop.f32.mrf.mxu3 }
  0xbf   :  { %v398_v12 = vpack.c.bf16 %v375_v10, %v375_v10  ;;  %v1455_v13 = vpack.c.bf16 %v388_v11, %v388_v11  ;;  %v339_v14 = vpop.f32.mrf.mxu0  ;;  %v352_v15 = vpop.f32.mrf.mxu1 }
  0xc1   :  { %v527_v18 = vsel %vm408_vm1, %v398_v12, 0  ;;  %v546_v19 = vsel %vm408_vm1, %v1455_v13, 0  ;;  %v803_v54 = vunpack.c.l.b16 %v398_v12  ;;  %v827_v57 = vunpack.c.l.b16 %v1455_v13 }
  0xc2   :  { %536 = vmatpush.bf16.xpose.msrb.mxu2 %v527_v18  ;;  %555 = vmatpush.bf16.xpose.msrb.mxu3 %v546_v19 }
  0xc3   :  { %1183 = vmatmul.msk.bf16.vlgmr.msrb.gmra.mxu0 %vm408_vm1, %v404_v16  ;;  %1184 = vmatmul.msk.bf16.vlgmr.msrb.gmra.mxu1 %vm408_vm1, %v405_v17  ;;  %v804_v56 = vpack.c.b16 %v803_v54, %v803_v54  ;;  %v828_v58 = vpack.c.b16 %v827_v57, %v827_v57 }
  0xc6   :  { %v377_v20 = vpop.f32.mrf.mxu2  ;;  %v390_v21 = vpop.f32.mrf.mxu3 }
  0xc9   :  { %1185 = vmatmul.msk.bf16.vlgmr.msrb.gmra.mxu2 %vm408_vm1, %v406_v22  ;;  %1186 = vmatmul.msk.bf16.vlgmr.msrb.gmra.mxu3 %vm408_vm1, %v407_v23 }
 0x10f   :  { %v734_v24 = vpop.permute.xlu2 %733 }
 0x110   :  { %v739_v25 = vsel %vm665_vm2, %v734_v24, 0 }
 0x111   :  { %748 = vmatpush.bf16.msra.mxu3 %v739_v25 }
 0x120   :  { %v661_v26 = vpop.permute.xlu1 %660 }
 0x121   :  { %v667_v27 = vsel %vm665_vm2, %v661_v26, 0 }
 0x122   :  { %676 = vmatpush.bf16.msra.mxu0 %v667_v27 }
 0x128   :  { %v710_v28 = vpop.permute.xlu1 %709 }
 0x129   :  { %v715_v29 = vsel %vm665_vm2, %v710_v28, 0 }
 0x12a   :  { %724 = vmatpush.bf16.msra.mxu2 %v715_v29 }
 0x130   :  { %v424_v30 = vpop.f32.mrf.mxu0  ;;  %v443_v31 = vpop.f32.mrf.mxu1 }
 0x131   :  { %v561_v32 = vsel %vm408_vm1, %v424_v30, -inf  ;;  %v564_v35 = vsel %vm408_vm1, %v443_v31, -inf }
 0x132   :  { %562 = vmax.xlane.f32.xlu1 %v561_v32  ;;  %v755_v32 = vunpack.c.l.b16 %v1445_v6 }
 0x138   :  { %v426_v33 = vpop.f32.mrf.mxu0  ;;  %v445_v34 = vpop.f32.mrf.mxu1 }
 0x139   :  { %v756_v33 = vpack.c.b16 %v755_v32, %v755_v32 }
 0x13a   :  { %565 = vmax.xlane.f32.xlu1 %v564_v35 }
 0x13c   :  { %v462_v36 = vpop.f32.mrf.mxu2  ;;  %v481_v37 = vpop.f32.mrf.mxu3 }
 0x13d   :  { %v567_v38 = vsel %vm408_vm1, %v462_v36, -inf  ;;  %v570_v45 = vsel %vm408_vm1, %v481_v37, -inf }
 0x13e   :  { %568 = vmax.xlane.f32.xlu0 %v567_v38 }
 0x140   :  { %v500_v39 = vpop.f32.mrf.mxu0  ;;  %v1478_v40 = vpop.f32.mrf.mxu1 }
 0x141   :  { %v576_v41 = vsel %vm408_vm1, %v1478_v40, -inf  ;;  %v573_v51 = vsel %vm408_vm1, %v500_v39, -inf }
 0x142   :  { %577 = vmax.xlane.f32.xlu1 %v576_v41 }
 0x144   :  { %v464_v42 = vpop.f32.mrf.mxu2  ;;  %v483_v44 = vpop.f32.mrf.mxu3 }
 0x146   :  { %571 = vmax.xlane.f32.xlu0 %v570_v45 }
 0x148   :  { %v502_v46 = vpop.f32.mrf.mxu0  ;;  %v521_v47 = vpop.f32.mrf.mxu1 }
 0x14c   :  { %v538_v48 = vpop.f32.mrf.mxu2  ;;  %v1483_v49 = vpop.f32.mrf.mxu3 }
 0x14d   :  { %v579_v50 = vsel %vm408_vm1, %v538_v48, -inf  ;;  %v582_v55 = vsel %vm408_vm1, %v1483_v49, -inf }
 0x14e   :  { %580 = vmax.xlane.f32.xlu2 %v579_v50  ;;  %574 = vmax.xlane.f32.xlu0 %v573_v51 }
 0x154   :  { %v540_v52 = vpop.f32.mrf.mxu2  ;;  %v559_v53 = vpop.f32.mrf.mxu3 }
 0x156   :  { %583 = vmax.xlane.f32.xlu2 %v582_v55 }
 0x15b   :  { %805 = vrot.lane.b32.xlu1 %v804_v56, %s1291_s1 }
 0x163   :  { %829 = vrot.lane.b32.xlu1 %v828_v58, %s1291_s1 }
 0x1a5   :  { %v563_v59 = vpop.xlane.xlu1 %562 }
 0x1a6   :  { %v585_v60 = vsub.f32 %v424_v30, %v563_v59 }
 0x1a8   :  { %v593_v61 = vmul.f32 1.442695, %v585_v60 }
 0x1aa   :  { %1227 = vpow2.f32 %v593_v61 }
 0x1ad   :  { %v566_v62 = vpop.xlane.xlu1 %565 }
 0x1ae   :  { %v586_v63 = vsub.f32 %v443_v31, %v566_v62 }
 0x1b0   :  { %v1492_v0 = vpop.eup %1227  ;;  %v595_v1 = vmul.f32 1.442695, %v586_v63 }
 0x1b1   :  { %v569_v2 = vpop.xlane.xlu0 %568  ;;  %v609_v5 = vsel %vm408_vm1, %v1492_v0, 0.0 }
 0x1b2   :  { %1229 = vpow2.f32 %v595_v1  ;;  %v587_v8 = vsub.f32 %v462_v36, %v569_v2  ;;  %610 = vadd.xlane.f32.xlu0 %v609_v5  ;;  %v683_v36 = vunpack.c.l.b16 %v1433_v43  ;;  %v779_v43 = vunpack.c.l.b16 %v1447_v7 }
 0x1b4   :  { %v597_v9 = vmul.f32 1.442695, %v587_v8 }
 0x1b5   :  { %v578_v24 = vpop.xlane.xlu1 %577 }
 0x1b6   :  { %1231 = vpow2.f32 %v597_v9  ;;  %v590_v42 = vsub.f32 %v1478_v40, %v578_v24 }
 0x1b8   :  { %v1496_v10 = vpop.eup %1229  ;;  %v603_v44 = vmul.f32 1.442695, %v590_v42 }
 0x1b9   :  { %v572_v11 = vpop.xlane.xlu0 %571  ;;  %v612_v12 = vsel %vm408_vm1, %v1496_v10, 0.0 }
 0x1ba   :  { %v588_v13 = vsub.f32 %v481_v37, %v572_v11  ;;  %613 = vadd.xlane.f32.xlu0 %v612_v12  ;;  %v684_v37 = vpack.c.b16 %v683_v36, %v683_v36 }
 0x1bc   :  { %v1232_v14 = vpop.eup %1231  ;;  %v599_v15 = vmul.f32 1.442695, %v588_v13 }
 0x1bd   :  { %v615_v16 = vsel %vm408_vm1, %v1232_v14, 0.0 }
 0x1be   :  { %1233 = vpow2.f32 %v599_v15  ;;  %616 = vadd.xlane.f32.xlu2 %v615_v16 }
 0x1c1   :  { %v581_v17 = vpop.xlane.xlu2 %580  ;;  %v575_v18 = vpop.xlane.xlu0 %574 }
 0x1c2   :  { %v591_v19 = vsub.f32 %v538_v48, %v581_v17  ;;  %v589_v20 = vsub.f32 %v500_v39, %v575_v18  ;;  %v780_v48 = vpack.c.b16 %v779_v43, %v779_v43 }
 0x1c4   :  { %v1234_v21 = vpop.eup %1233  ;;  %v605_v22 = vmul.f32 1.442695, %v591_v19  ;;  %v601_v23 = vmul.f32 1.442695, %v589_v20 }
 0x1c5   :  { %v618_v25 = vsel %vm408_vm1, %v1234_v21, 0.0 }
 0x1c6   :  { %1235 = vpow2.f32 %v605_v22  ;;  %619 = vadd.xlane.f32.xlu0 %v618_v25  ;;  %v71_v25 = vld [vmem:[%s1581_s4] sm:$0xf] }
 0x1c7   :  { %1237 = vpow2.f32 %v601_v23 }
 0x1c9   :  { %v584_v38 = vpop.xlane.xlu2 %583 }
 0x1ca   :  { %v592_v39 = vsub.f32 %v1483_v49, %v584_v38 }
 0x1cc   :  { %v1236_v26 = vpop.eup %1235  ;;  %v607_v41 = vmul.f32 1.442695, %v592_v39 }
 0x1cd   :  { %v1502_v27 = vpop.eup %1237  ;;  %v806_v28 = vpop.permute.xlu1 %805  ;;  %v627_v29 = vsel %vm408_vm1, %v1236_v26, 0.0 }
 0x1ce   :  { %v811_v30 = vsel %vm665_vm2, %v806_v28, 0  ;;  %628 = vadd.xlane.f32.xlu0 %v627_v29  ;;  %v621_v31 = vsel %vm408_vm1, %v1502_v27, 0.0  ;;  %1239 = vpow2.f32 %v607_v41  ;;  %v73_v29 = vld [vmem:[%s1581_s4 + $0x8] sm:$0xf] }
 0x1cf   :  { %622 = vadd.xlane.f32.xlu1 %v621_v31  ;;  %820 = vmatpush.bf16.msrb.mxu2 %v811_v30  ;;  %1241 = vpow2.f32 %v603_v44  ;;  %v932_v30 = vsel %vm665_vm2, %v73_v29, 0 }
 0x1d4   :  { %v1240_v6 = vpop.eup %1239 }
 0x1d5   :  { %v830_v34 = vpop.permute.xlu1 %829  ;;  %v630_v45 = vsel %vm408_vm1, %v1240_v6, 0.0  ;;  %v1242_v46 = vpop.eup %1241 }
 0x1d6   :  { %v835_v35 = vsel %vm665_vm2, %v830_v34, 0  ;;  %757 = vrot.lane.b32.xlu2 %v756_v33, %s1291_s1  ;;  %v624_v47 = vsel %vm408_vm1, %v1242_v46, 0.0  ;;  %v74_v33 = vld [vmem:[%s1581_s4 + $0xc] sm:$0xf] }
 0x1d7   :  { %844 = vmatpush.bf16.msrb.mxu3 %v835_v35  ;;  %v967_v34 = vsel %vm665_vm2, %v74_v33, 0 }
 0x1e2   :  { %685 = vrot.lane.b32.xlu0 %v684_v37, %s1291_s1 }
 0x1ff   :  { %631 = vadd.xlane.f32.xlu2 %v630_v45 }
 0x20c   :  { %625 = vadd.xlane.f32.xlu0 %v624_v47 }
 0x217   :  { %781 = vrot.lane.b32.xlu2 %v780_v48, %s1291_s1 }
 0x225   :  { %v611_v49 = vpop.xlane.xlu0 %610 }
 0x226   :  { %1243 = vrcp.f32 %v611_v49 }
 0x22c   :  { %v1244_v50 = vpop.eup %1243 }
 0x22d   :  { %v641_v40 = vmul.f32 %v1244_v50, %v1492_v0  ;;  %v614_v52 = vpop.xlane.xlu0 %613 }
 0x22f   :  { %v649_v51 = vpack.c.bf16 %v641_v40, %v641_v40 }
 0x231   :  { %v617_v53 = vpop.xlane.xlu2 %616  ;;  %1187 = vmatmul.msk.bf16.vlgmr.msra.gmra.mxu0 %vm408_vm1, %v649_v51 }
 0x232   :  { %1245 = vrcp.f32 %v617_v53 }
 0x238   :  { %v1246_v54 = vpop.eup %1245 }
 0x239   :  { %v643_v55 = vmul.f32 %v1246_v54, %v1232_v14  ;;  %v758_v56 = vpop.permute.xlu2 %757  ;;  %v620_v57 = vpop.xlane.xlu0 %619 }
 0x23a   :  { %v763_v7 = vsel %vm665_vm2, %v758_v56, 0  ;;  %1247 = vrcp.f32 %v620_v57 }
 0x23b   :  { %v651_v58 = vpack.c.bf16 %v643_v55, %v643_v55  ;;  %772 = vmatpush.bf16.msrb.mxu0 %v763_v7 }
 0x23d   :  { %1189 = vmatmul.msk.bf16.vlgmr.msra.gmra.mxu2 %vm408_vm1, %v651_v58 }
 0x240   :  { %v1248_v59 = vpop.eup %1247 }
 0x241   :  { %v644_v60 = vmul.f32 %v1248_v59, %v1234_v21  ;;  %v629_v61 = vpop.xlane.xlu0 %628 }
 0x242   :  { %v623_v62 = vpop.xlane.xlu1 %622  ;;  %1249 = vrcp.f32 %v629_v61 }
 0x243   :  { %v652_v63 = vpack.c.bf16 %v644_v60, %v644_v60  ;;  %1251 = vrcp.f32 %v623_v62 }
 0x244   :  { %1253 = vrcp.f32 %v614_v52 }
 0x245   :  { %1190 = vmatmul.msk.bf16.vlgmr.msra.gmra.mxu3 %vm408_vm1, %v652_v63 }
 0x248   :  { %v1250_v0 = vpop.eup %1249 }
 0x249   :  { %v1252_v1 = vpop.eup %1251  ;;  %v647_v2 = vmul.f32 %v1250_v0, %v1236_v26  ;;  %v862_v26 = vsel %vm665_vm2, %v71_v25, 0 }
 0x24a   :  { %v645_v5 = vmul.f32 %v1252_v1, %v1502_v27  ;;  %v1254_v11 = vpop.eup %1253  ;;  %871 = vmatpush.bf16.msra.mxu0 %v862_v26  ;;  %v72_v27 = vld [vmem:[%s1581_s4 + $0x4] sm:$0xf] }
 0x24b   :  { %v655_v8 = vpack.c.bf16 %v647_v2, %v647_v2  ;;  %v642_v12 = vmul.f32 %v1254_v11, %v1496_v10  ;;  %v897_v28 = vsel %vm665_vm2, %v72_v27, 0  ;;  %v1224_v2 = vld [vmem:[%s1582_s5] ss:$0 sm:$0xff]  ;;  %v1292_v27 = vmov 32.0  }
 0x24c   :  { %v653_v9 = vpack.c.bf16 %v645_v5, %v645_v5  ;;  %906 = vmatpush.bf16.msra.mxu2 %v897_v28  ;;  %922 = vmatpush.bf16.msra.mxu3 %v897_v28 }
 0x24d   :  { %1193 = vmatmul.msk.bf16.vlgmr.msrb.gmra.mxu2 %vm408_vm1, %v655_v8  ;;  %v650_v15 = vpack.c.bf16 %v642_v12, %v642_v12 }
 0x24e   :  { %1191 = vmatmul.msk.bf16.vlgmr.msrb.gmra.mxu0 %vm408_vm1, %v653_v9 }
 0x24f   :  { %941 = vmatpush.bf16.msrb.mxu0 %v932_v30 }
 0x250   :  { %976 = vmatpush.bf16.msrb.mxu2 %v967_v34 }
 0x254   :  { %v686_v13 = vpop.permute.xlu0 %685 }
 0x255   :  { %v691_v14 = vsel %vm665_vm2, %v686_v13, 0 }
 0x256   :  { %700 = vmatpush.bf16.msra.mxu1 %v691_v14 }
 0x259   :  { %1188 = vmatmul.msk.bf16.vlgmr.msra.gmra.mxu1 %vm408_vm1, %v650_v15 }
 0x272   :  { %v632_v16 = vpop.xlane.xlu2 %631 }
 0x273   :  { %1255 = vrcp.f32 %v632_v16 }
 0x279   :  { %v1256_v17 = vpop.eup %1255 }
 0x27a   :  { %v648_v18 = vmul.f32 %v1256_v17, %v1240_v6  ;;  %v782_v19 = vpop.permute.xlu2 %781 }
 0x27b   :  { %v787_v20 = vsel %vm665_vm2, %v782_v19, 0 }
 0x27c   :  { %v656_v21 = vpack.c.bf16 %v648_v18, %v648_v18  ;;  %796 = vmatpush.bf16.msrb.mxu1 %v787_v20 }
 0x27e   :  { %1194 = vmatmul.msk.bf16.vlgmr.msrb.gmra.mxu3 %vm408_vm1, %v656_v21 }
 0x27f   :  { %v626_v22 = vpop.xlane.xlu0 %625  ;;  %992 = vmatpush.bf16.msrb.mxu3 %v967_v34 }
 0x280   :  { %1257 = vrcp.f32 %v626_v22  ;;  %887 = vmatpush.bf16.msra.mxu1 %v862_v26 }
 0x281   :  { %1259 = vrcp.f32 %v1292_v27 }
 0x286   :  { %v1258_v10 = vpop.eup %1257 }
 0x287   :  { %v646_v23 = vmul.f32 %v1258_v10, %v1242_v46  ;;  %v1260_v28 = vpop.eup %1259 }
 0x288   :  { %v1019_v29 = vmul.f32 32.0, %v1260_v28  ;;  %vm1023_vm3 = vweird.f32 %v1260_v28 }
 0x289   :  { %v654_v24 = vpack.c.bf16 %v646_v23, %v646_v23 }
 0x28b   :  { %1192 = vmatmul.msk.bf16.vlgmr.msrb.gmra.mxu1 %vm408_vm1, %v654_v24 }
 0x28c   :  { %957 = vmatpush.bf16.msrb.mxu1 %v932_v30  ;;  %v1020_v30 = vsub.f32 1.0, %v1019_v29 }
 0x2ae   :  { %v678_v31 = vpop.f32.mrf.mxu0 }
 0x2af   :  { %v850_v32 = vpack.c.bf16 %v678_v31, %v678_v31  ;;  %v1021_v31 = vmul.f32 %v1260_v28, %v1020_v30 }
 0x2b1   :  { %1195 = vmatmul.msk.bf16.vlgmr.msra.gmra.mxu0 %vm408_vm1, %v850_v32  ;;  %v1022_v32 = vadd.f32 %v1260_v28, %v1021_v31 }
 0x2b3   :  { %v1024_v33 = vsel %vm1023_vm3, %v1260_v28, %v1022_v32 }
 0x2b6   :  { %v680_v35 = vpop.f32.mrf.mxu0 }
 0x2c0   :  { %v726_v36 = vpop.f32.mrf.mxu2 }
 0x2c1   :  { %v852_v37 = vpack.c.bf16 %v726_v36, %v726_v36 }
 0x2c3   :  { %1197 = vmatmul.msk.bf16.vlgmr.msra.gmra.mxu2 %vm408_vm1, %v852_v37 }
 0x2c8   :  { %v728_v38 = vpop.f32.mrf.mxu2  ;;  %v750_v39 = vpop.f32.mrf.mxu3 }
 0x2c9   :  { %v853_v41 = vpack.c.bf16 %v750_v39, %v750_v39 }
 0x2cb   :  { %v774_v42 = vpop.f32.mrf.mxu0  ;;  %1198 = vmatmul.msk.bf16.vlgmr.msra.gmra.mxu3 %vm408_vm1, %v853_v41 }
 0x2cc   :  { %v854_v6 = vpack.c.bf16 %v774_v42, %v774_v42 }
 0x2ce   :  { %1199 = vmatmul.msk.bf16.vlgmr.msrb.gmra.mxu0 %vm408_vm1, %v854_v6 }
 0x2d0   :  { %v752_v44 = vpop.f32.mrf.mxu3  ;;  %v822_v45 = vpop.f32.mrf.mxu2 }
 0x2d1   :  { %v856_v46 = vpack.c.bf16 %v822_v45, %v822_v45 }
 0x2d3   :  { %v776_v47 = vpop.f32.mrf.mxu0  ;;  %1201 = vmatmul.msk.bf16.vlgmr.msrb.gmra.mxu2 %vm408_vm1, %v856_v46 }
 0x2d6   :  { %v702_v43 = vpop.f32.mrf.mxu1 }
 0x2d7   :  { %v851_v48 = vpack.c.bf16 %v702_v43, %v702_v43  ;;  %v1225_v43 = vld [vmem:[%s1583_s6] ss:$0 sm:$0xff]  ;;  %s1293_s6 = smov [#allocation2]  }
 0x2d8   :  { %v824_v49 = vpop.f32.mrf.mxu2 }
 0x2d9   :  { %1196 = vmatmul.msk.bf16.vlgmr.msra.gmra.mxu1 %vm408_vm1, %v851_v48 }
 0x2de   :  { %v704_v50 = vpop.f32.mrf.mxu1 }
 0x2df   :  { %v1226_v50 = vld [vmem:[%s1584_s7] ss:$0 sm:$0xff]  ;;  %s1085_s7 = sshll.u32 %s1293_s6, 4  ;;  %s1086_s7 = int_to_ptr.vmem [resolvable:$true] %s1085_s7 }
 0x301   :  { %v846_v40 = vpop.f32.mrf.mxu3 }
 0x302   :  { %v857_v51 = vpack.c.bf16 %v846_v40, %v846_v40 }
 0x304   :  { %1202 = vmatmul.msk.bf16.vlgmr.msrb.gmra.mxu3 %vm408_vm1, %v857_v51 }
 0x308   :  { %v798_v52 = vpop.f32.mrf.mxu1 }
 0x309   :  { %v855_v53 = vpack.c.bf16 %v798_v52, %v798_v52  ;;  %v848_v54 = vpop.f32.mrf.mxu3 }
 0x30b   :  { %1200 = vmatmul.msk.bf16.vlgmr.msrb.gmra.mxu1 %vm408_vm1, %v855_v53 }
 0x310   :  { %v800_v55 = vpop.f32.mrf.mxu1 }
 0x32e   :  { %v873_v56 = vpop.f32.mrf.mxu0 }
 0x336   :  { %v875_v57 = vpop.f32.mrf.mxu0 }
 0x346   :  { %v908_v7 = vpop.f32.mrf.mxu2 }
 0x347   :  { %v998_v62 = vadd.f32 %v908_v7, %v873_v56 }
 0x34b   :  { %v943_v58 = vpop.f32.mrf.mxu0 }
 0x34c   :  { %v1000_v63 = vadd.f32 %v998_v62, %v943_v58 }
 0x34e   :  { %v910_v59 = vpop.f32.mrf.mxu2  ;;  %v924_v60 = vpop.f32.mrf.mxu3 }
 0x353   :  { %v945_v61 = vpop.f32.mrf.mxu0 }
 0x356   :  { %v889_v0 = vpop.f32.mrf.mxu1  ;;  %v926_v1 = vpop.f32.mrf.mxu3 }
 0x357   :  { %v978_v5 = vpop.f32.mrf.mxu2  ;;  %v999_v17 = vadd.f32 %v924_v60, %v889_v0 }
 0x358   :  { %v1002_v8 = vadd.f32 %v1000_v63, %v978_v5 }
 0x35a   :  { %v1008_v9 = vadd.f32 %v1224_v2, %v1002_v8 }
 0x35c   :  { %v1010_v11 = vadd.f32 %v1008_v9, %v1353_v3 }
 0x35e   :  { %v891_v12 = vpop.f32.mrf.mxu1  ;;  %v1012_v13 = vsel %vm87_vm0, %v1010_v11, 0.0  ;;  %v1027_v14 = vmul.f32 %v1010_v11, %v1010_v11 }
 0x35f   :  { %v980_v15 = vpop.f32.mrf.mxu2  ;;  %1013 = vadd.xlane.f32.xlu1 %v1012_v13 }
 0x360   :  { %v1029_v16 = vsel %vm87_vm0, %v1027_v14, 0.0 }
 0x361   :  { %1030 = vadd.xlane.f32.xlu2 %v1029_v16 }
 0x387   :  { %v994_v18 = vpop.f32.mrf.mxu3 }
 0x388   :  { %v959_v19 = vpop.f32.mrf.mxu1 }
 0x389   :  { %v1001_v20 = vadd.f32 %v999_v17, %v959_v19 }
 0x38b   :  { %v1003_v21 = vadd.f32 %v1001_v20, %v994_v18 }
 0x38d   :  { %v1009_v22 = vadd.f32 %v1224_v2, %v1003_v21 }
 0x38f   :  { %v996_v10 = vpop.f32.mrf.mxu3  ;;  %v1011_v23 = vadd.f32 %v1009_v22, %v1358_v4 }
 0x390   :  { %v961_v24 = vpop.f32.mrf.mxu1 }
 0x391   :  { %v1015_v3 = vsel %vm87_vm0, %v1011_v23, 0.0  ;;  %v1028_v25 = vmul.f32 %v1011_v23, %v1011_v23 }
 0x392   :  { %1016 = vadd.xlane.f32.xlu0 %v1015_v3 }
 0x393   :  { %v1032_v26 = vsel %vm87_vm0, %v1028_v25, 0.0 }
 0x394   :  { %1033 = vadd.xlane.f32.xlu1 %v1032_v26 }
 0x3d2   :  { %v1014_v34 = vpop.xlane.xlu1 %1013 }
 0x3d3   :  { %v1025_v35 = vmul.f32 %v1024_v33, %v1014_v34 }
 0x3d4   :  { %v1031_v4 = vpop.xlane.xlu2 %1030 }
 0x3d5   :  { %v1037_v36 = vmul.f32 %v1025_v35, %v1025_v35  ;;  %v1035_v37 = vmul.f32 %v1031_v4, %v1024_v33  ;;  %v1041_v47 = vsub.f32 %v1010_v11, %v1025_v35 }
 0x3d7   :  { %v1039_v38 = vsub.f32 %v1035_v37, %v1037_v36 }
 0x3d9   :  { %v1043_v39 = vadd.f32 1e-05, %v1039_v38 }
 0x3db   :  { %1261 = vrsqrt.f32 %v1043_v39  ;;  %vm1051_vm5 = vweird.f32 %v1043_v39 }
 0x3e1   :  { %v1262_v41 = vpop.eup %1261 }
 0x3e2   :  { %v1046_v42 = vmul.f32 %v1262_v41, %v1043_v39  ;;  %vm1052_vm4 = vweird.f32 %v1262_v41 }
 0x3e3   :  { %vm1053_vm6 = vmor %vm1051_vm5, %vm1052_vm4 }
 0x3e4   :  { %v1047_v6 = vmul.f32 %v1262_v41, %v1046_v42 }
 0x3e6   :  { %v1048_v44 = vmul.f32 0.5, %v1047_v6 }
 0x3e8   :  { %v1049_v45 = vsub.f32 1.5, %v1048_v44 }
 0x3ea   :  { %v1050_v46 = vmul.f32 %v1262_v41, %v1049_v45 }
 0x3ec   :  { %v1054_v48 = vsel %vm1053_vm6, %v1262_v41, %v1050_v46 }
 0x3ed   :  { %v1065_v49 = vmul.f32 %v1054_v48, %v1041_v47 }
 0x3ef   :  { %v1071_v40 = vmul.f32 %v1225_v43, %v1065_v49 }
 0x3f1   :  { %v1077_v51 = vadd.f32 %v1226_v50, %v1071_v40 }
 0x3f3   :  { %1079 = vst.msk [vmem:[#allocation2] sm:$0xff] %vm87_vm0, %v1077_v51 }
 0x405   :  { %v1017_v52 = vpop.xlane.xlu0 %1016 }
 0x406   :  { %v1026_v53 = vmul.f32 %v1024_v33, %v1017_v52 }
 0x407   :  { %v1034_v54 = vpop.xlane.xlu1 %1033 }
 0x408   :  { %v1038_v55 = vmul.f32 %v1026_v53, %v1026_v53  ;;  %v1036_v56 = vmul.f32 %v1034_v54, %v1024_v33  ;;  %v1042_v0 = vsub.f32 %v1011_v23, %v1026_v53 }
 0x40a   :  { %v1040_v57 = vsub.f32 %v1036_v56, %v1038_v55 }
 0x40c   :  { %v1044_v7 = vadd.f32 1e-05, %v1040_v57 }
 0x40e   :  { %1263 = vrsqrt.f32 %v1044_v7  ;;  %vm1061_vm8 = vweird.f32 %v1044_v7 }
 0x414   :  { %v1264_v58 = vpop.eup %1263 }
 0x415   :  { %v1056_v59 = vmul.f32 %v1264_v58, %v1044_v7  ;;  %vm1062_vm7 = vweird.f32 %v1264_v58 }
 0x416   :  { %vm1063_vm9 = vmor %vm1061_vm8, %vm1062_vm7 }
 0x417   :  { %v1057_v60 = vmul.f32 %v1264_v58, %v1056_v59 }
 0x419   :  { %v1058_v61 = vmul.f32 0.5, %v1057_v60 }
 0x41b   :  { %v1059_v62 = vsub.f32 1.5, %v1058_v61 }
 0x41d   :  { %v1060_v63 = vmul.f32 %v1264_v58, %v1059_v62 }
 0x41f   :  { %v1064_v1 = vsel %vm1063_vm9, %v1264_v58, %v1060_v63 }
 0x420   :  { %v1066_v2 = vmul.f32 %v1064_v1, %v1042_v0 }
 0x422   :  { %v1072_v5 = vmul.f32 %v1225_v43, %v1066_v2 }
 0x424   :  { %v1078_v8 = vadd.f32 %v1226_v50, %v1072_v5 }
 0x426   :  { %1080 = vst.msk [vmem:[#allocation2 + $0x8] sm:$0xff] %vm87_vm0, %v1078_v8 }
 0x427   :  { %1093 = dma.vmem_to_hbm [thread:$0]  %s1086_s7, 256, %s1088_s10, [#allocation3], %s1294_s11, %s1294_s11, %s1295_s12  }
 0x428   :  { %1289 = dma.done.wait [#allocation3], 256  }
 0x429   :  { %1290 = vsyncadd [#allocation3], 4294967040 }
 0x42a   :  { %1098 = vsyncpa [#allocation3], 1 }

</bundles_post_ra>
